<compile_context>
chip_gen: v7x
topology: tpu7x:2x2x1
jax: 0.10.0
libtpu: 0.0.40
codegen_flags: <defaults>
</compile_context>

<pallas_src>
import functools
import math

import jax
import jax.numpy as jnp
import numpy as np
from jax import lax
from jax.experimental import pallas as pl
from jax.experimental.pallas import tpu as pltpu


def _round_up(x: int, m: int) -> int:
    return ((x + m - 1) // m) * m


def _conv1d_kernel(x_cur_ref, x_nxt_ref, w_ref, b_ref, o_ref, *,
                   dilation: int, k_taps: int, t_tile: int):
    """One (batch, time-tile) cell per grid step.

    x_cur_ref: (1, C_in, T_TILE)   current aligned input tile (bf16)
    x_nxt_ref: (1, C_in, T_TILE)   next aligned input tile (halo source, bf16)
    w_ref:     (C_out, K*C_in)     folded weight (bf16), resident
    b_ref:     (C_out, 1)          bias (f32), resident
    o_ref:     (1, C_out, T_TILE)  output tile (f32), lane-dense store
    """
    cur = x_cur_ref[0]                                        # (C_in, T_TILE)
    cols = [cur]
    # Lightweight im2col: tap k is the tile shifted left by k*dilation, with the
    # tail filled from the next tile (the halo). Static slices + concats only.
    for k in range(1, k_taps):
        sh = k * dilation
        cols.append(jnp.concatenate([cur[:, sh:], x_nxt_ref[0, :, :sh]], axis=1))
    x_col = cols[0] if k_taps == 1 else jnp.concatenate(cols, axis=0)  # (K*C_in, T_TILE)

    # Single MXU matmul with contraction depth K*C_in, f32 accumulation.
    acc = jnp.dot(w_ref[...], x_col, preferred_element_type=jnp.float32)
    o_ref[0, :, :] = (acc + b_ref[...]).astype(o_ref.dtype)


def conv_norm_forward(signal, weight, bias, *, stride=1, dilation=1, padding=None,
                      t_tile=None, compute_dtype=jnp.bfloat16):
    """ConvNorm.forward for the default (non-partial-padding) path.

    signal: (B, C_in, T) float32
    weight: (C_out, C_in, K) float32
    bias:   (C_out,) float32
    """
    assert stride == 1, "ConvNorm default stride=1 is what is implemented here"
    B, C_in, T = signal.shape
    C_out, _, K = weight.shape
    if padding is None:
        assert K % 2 == 1
        padding = dilation * (K - 1) // 2

    halo = dilation * (K - 1)
    T_out = T + 2 * padding - halo          # == T for "same" padding, stride 1

    if t_tile is None:
        t_tile = min(512, _round_up(max(T_out, 1), 128))
    assert t_tile % 128 == 0, "t_tile must be a multiple of 128 (lane-dense)"
    assert halo <= t_tile, "halo larger than one tile not supported"  # TODO(synk)

    T_out_ceil = _round_up(T_out, t_tile)
    n_t = T_out_ceil // t_tile
    # Padded input holds n_t + 1 aligned tiles so the "next tile" (halo) block
    # index is always valid; extra columns are zeros.
    T_in_total = (n_t + 1) * t_tile
    pad_left = padding
    pad_right = T_in_total - pad_left - T
    assert pad_right >= 0

    x_pad = jnp.pad(signal.astype(compute_dtype),
                    ((0, 0), (0, 0), (pad_left, pad_right)))
    # Fold K into the contraction axis: (C_out, C_in, K) -> (C_out, K*C_in) with
    # C_in on the fast axis inside each tap block (matches the im2col stacking).
    w2d = jnp.transpose(weight, (0, 2, 1)).reshape(C_out, K * C_in).astype(compute_dtype)
    b2d = bias.reshape(C_out, 1).astype(jnp.float32)

    kernel = functools.partial(_conv1d_kernel, dilation=dilation, k_taps=K,
                               t_tile=t_tile)

    out = pl.pallas_call(
        kernel,
        out_shape=jax.ShapeDtypeStruct((B, C_out, T_out_ceil), signal.dtype),
        grid_spec=pltpu.PrefetchScalarGridSpec(
            num_scalar_prefetch=0,
            grid=(B, n_t),
            in_specs=[
                pl.BlockSpec((1, C_in, t_tile), lambda b, t: (b, 0, t)),      # current tile
                pl.BlockSpec((1, C_in, t_tile), lambda b, t: (b, 0, t + 1)),  # halo tile
                pl.BlockSpec((C_out, K * C_in), lambda b, t: (0, 0)),         # weight (resident)
                pl.BlockSpec((C_out, 1), lambda b, t: (0, 0)),                # bias (resident)
            ],
            out_specs=pl.BlockSpec((1, C_out, t_tile), lambda b, t: (b, 0, t)),
        ),
        compiler_params=pltpu.CompilerParams(
            dimension_semantics=("parallel", "parallel"),
            vmem_limit_bytes=32 * 1024 * 1024,
        ),
    )(x_pad, x_pad, w2d, b2d)
    return out[:, :, :T_out]


def init_conv_norm_params(key, in_channels, out_channels, kernel_size,
                          w_init_gain="linear"):
    """Deterministic parameter init matching ConvNorm.__init__."""
    kw, kb = jax.random.split(key)
    gain = 1.0  # torch.nn.init.calculate_gain('linear') == 1.0
    fan_in = in_channels * kernel_size
    fan_out = out_channels * kernel_size
    bound_w = gain * math.sqrt(6.0 / (fan_in + fan_out))  # xavier_uniform_
    weight = jax.random.uniform(
        kw, (out_channels, in_channels, kernel_size),
        minval=-bound_w, maxval=bound_w, dtype=jnp.float32)
    bound_b = 1.0 / math.sqrt(fan_in)  # PyTorch Conv1d default bias init
    bias = jax.random.uniform(
        kb, (out_channels,), minval=-bound_b, maxval=bound_b, dtype=jnp.float32)
    return weight, bias


if __name__ == "__main__":
    # Small ConvNorm config: in_channels=4, out_channels=8, kernel_size=3.
    B, C_in, T = 2, 4, 16
    C_out, K = 8, 3
    dilation = 1

    key = jax.random.PRNGKey(0)
    k_x, k_p = jax.random.split(key)
    signal = jax.random.normal(k_x, (B, C_in, T), dtype=jnp.float32)
    weight, bias = init_conv_norm_params(k_p, C_in, C_out, K)

    out = conv_norm_forward(signal, weight, bias, dilation=dilation)
    out = jax.block_until_ready(out)
    assert out.shape == (B, C_out, T)

    # Reference: XLA conv with the same bf16-operand / f32-accumulate recipe.
    pad = dilation * (K - 1) // 2
    ref = lax.conv_general_dilated(
        signal.astype(jnp.bfloat16), weight.astype(jnp.bfloat16),
        window_strides=(1,), padding=[(pad, pad)],
        rhs_dilation=(dilation,),
        dimension_numbers=("NCH", "OIH", "NCH"),
        preferred_element_type=jnp.float32,
    ) + bias.reshape(1, C_out, 1)
    np.testing.assert_allclose(np.asarray(out), np.asarray(ref),
                               rtol=1e-3, atol=1e-3)

    print("KERNEL_OK")
</pallas_src>

<mosaic_0001>
module attributes {stable_mosaic.version = 11 : i64} {
  func.func @_conv1d_kernel(%arg0: i32, %arg1: i32, %arg2: memref<1x4x128xbf16, #tpu.memory_space<vmem>>, %arg3: memref<1x4x128xbf16, #tpu.memory_space<vmem>>, %arg4: memref<8x12xbf16, #tpu.memory_space<vmem>>, %arg5: memref<8x1xf32, #tpu.memory_space<vmem>>, %arg6: memref<1x8x128xf32, #tpu.memory_space<vmem>>) attributes {dimension_semantics = [#tpu.dimension_semantics<parallel>, #tpu.dimension_semantics<parallel>], iteration_bounds = array<i64: 2, 1>, scalar_prefetch = 0 : i64, scratch_operands = 0 : i64, tpu.core_type = #tpu.core_type<tc>, window_params = [{transform_indices = @transform_0, window_bounds = array<i64: 1, 4, 128>}, {transform_indices = @transform_1, window_bounds = array<i64: 1, 4, 128>}, {pipeline_mode = #tpu.pipeline_mode<synchronous>, transform_indices = @transform_2, window_bounds = array<i64: 8, 12>}, {pipeline_mode = #tpu.pipeline_mode<synchronous>, transform_indices = @transform_3, window_bounds = array<i64: 8, 1>}, {transform_indices = @transform_4, window_bounds = array<i64: 1, 8, 128>}]} {
    %c0 = arith.constant 0 : index
    %c0_0 = arith.constant 0 : index
    %c0_1 = arith.constant 0 : index
    %0 = vector.load %arg2[%c0, %c0_0, %c0_1] : memref<1x4x128xbf16, #tpu.memory_space<vmem>>, vector<1x4x128xbf16>
    %1 = vector.shape_cast %0 : vector<1x4x128xbf16> to vector<4x128xbf16>
    %2 = vector.extract_strided_slice %1 {offsets = [0, 1], sizes = [4, 127], strides = [1, 1]} : vector<4x128xbf16> to vector<4x127xbf16>
    %c0_2 = arith.constant 0 : index
    %c0_3 = arith.constant 0 : index
    %c0_4 = arith.constant 0 : index
    %3 = vector.load %arg3[%c0_2, %c0_3, %c0_4] : memref<1x4x128xbf16, #tpu.memory_space<vmem>>, vector<1x4x1xbf16>
    %4 = vector.shape_cast %3 : vector<1x4x1xbf16> to vector<4x1xbf16>
    %5 = tpu.concatenate %2, %4 in 1 : vector<4x127xbf16>, vector<4x1xbf16> -> vector<4x128xbf16>
    %6 = vector.extract_strided_slice %1 {offsets = [0, 2], sizes = [4, 126], strides = [1, 1]} : vector<4x128xbf16> to vector<4x126xbf16>
    %c0_5 = arith.constant 0 : index
    %c0_6 = arith.constant 0 : index
    %c0_7 = arith.constant 0 : index
    %7 = vector.load %arg3[%c0_5, %c0_6, %c0_7] : memref<1x4x128xbf16, #tpu.memory_space<vmem>>, vector<1x4x2xbf16>
    %8 = vector.shape_cast %7 : vector<1x4x2xbf16> to vector<4x2xbf16>
    %9 = tpu.concatenate %6, %8 in 1 : vector<4x126xbf16>, vector<4x2xbf16> -> vector<4x128xbf16>
    %10 = tpu.concatenate %1, %5, %9 in 0 : vector<4x128xbf16>, vector<4x128xbf16>, vector<4x128xbf16> -> vector<12x128xbf16>
    %c0_8 = arith.constant 0 : index
    %c0_9 = arith.constant 0 : index
    %11 = vector.load %arg4[%c0_8, %c0_9] : memref<8x12xbf16, #tpu.memory_space<vmem>>, vector<8x12xbf16>
    %cst = arith.constant dense<0.000000e+00> : vector<8x128xf32>
    %12 = tpu.matmul %11, %10, %cst {dimension_numbers = #tpu.dot_dimension_numbers<[1], [0], [0], [1], [0, 0, 1, 1], [], []>} : vector<8x12xbf16>, vector<12x128xbf16>, vector<8x128xf32> -> vector<8x128xf32>
    %c0_10 = arith.constant 0 : index
    %c0_11 = arith.constant 0 : index
    %13 = vector.load %arg5[%c0_10, %c0_11] : memref<8x1xf32, #tpu.memory_space<vmem>>, vector<8x1xf32>
    %14 = vector.broadcast %13 : vector<8x1xf32> to vector<8x128xf32>
    %15 = arith.addf %12, %14 : vector<8x128xf32>
    %c0_12 = arith.constant 0 : index
    %c0_13 = arith.constant 0 : index
    %c0_14 = arith.constant 0 : index
    %16 = vector.load %arg6[%c0_12, %c0_13, %c0_14] : memref<1x8x128xf32, #tpu.memory_space<vmem>>, vector<1x8x128xf32>
    %17 = vector.shape_cast %16 : vector<1x8x128xf32> to vector<8x128xf32>
    %18 = vector.shape_cast %15 : vector<8x128xf32> to vector<1x8x128xf32>
    tpu.vector_store %arg6[%c0_12, %c0_13, %c0_14], %18 {strides = array<i32>} : memref<1x8x128xf32, #tpu.memory_space<vmem>>, vector<1x8x128xf32>,
    return
  }
  func.func @transform_0(%arg0: i32, %arg1: i32) -> (i32, i32, i32) {
    %c0_i32 = arith.constant 0 : i32
    %c0_i32_0 = arith.constant 0 : i32
    return %arg0, %c0_i32, %arg1 : i32, i32, i32
  }
  func.func @transform_1(%arg0: i32, %arg1: i32) -> (i32, i32, i32) {
    %c1_i32 = arith.constant 1 : i32
    %0 = arith.addi %arg1, %c1_i32 : i32
    %c0_i32 = arith.constant 0 : i32
    %c0_i32_0 = arith.constant 0 : i32
    return %arg0, %c0_i32, %0 : i32, i32, i32
  }
  func.func @transform_2(%arg0: i32, %arg1: i32) -> (i32, i32) {
    %c0_i32 = arith.constant 0 : i32
    %c0_i32_0 = arith.constant 0 : i32
    %c0_i32_1 = arith.constant 0 : i32
    return %c0_i32, %c0_i32_0 : i32, i32
  }
  func.func @transform_3(%arg0: i32, %arg1: i32) -> (i32, i32) {
    %c0_i32 = arith.constant 0 : i32
    %c0_i32_0 = arith.constant 0 : i32
    %c0_i32_1 = arith.constant 0 : i32
    return %c0_i32, %c0_i32_0 : i32, i32
  }
  func.func @transform_4(%arg0: i32, %arg1: i32) -> (i32, i32, i32) {
    %c0_i32 = arith.constant 0 : i32
    %c0_i32_0 = arith.constant 0 : i32
    return %arg0, %c0_i32, %arg1 : i32, i32, i32
  }
}

</mosaic_0001>

<bundles_post_ra>
// kernel: tpu_custom_call.1
= control target key start
LH: loop header
LB: loop body
LE: loop exit
PB: predicated region body
PF: predicated region fallthrough
CT: control target
= control target key end

     0   :  { %9 = vsyncpa [#allocation3], 0  ;;  %s910_s0 = inlined_call_operand.vmem [shape: bf16[2,4,256], index: 0, kind: input, shape index: {}]   ;;  %s911_s1 = inlined_call_operand.hbm [shape: bf16[2,4,256], index: 1, kind: input, shape index: {}]   ;;  %s912_s2 = inlined_call_operand.vmem [shape: bf16[8,12], index: 2, kind: input, shape index: {}]   ;;  %s913_s3 = inlined_call_operand.vmem [shape: f32[8,1], index: 3, kind: input, shape index: {}]   ;;  %s914_s4 = inlined_call_operand.hbm [shape: f32[2,8,128], index: 4, kind: output, shape index: {}]  }
   0x1   :  { %11 = vsyncpa [#allocation3 + $0x1], 0 }
   0x2   :  { %12 = vsyncpa [#allocation4], 0 }
   0x3   :  { %14 = vsyncpa [#allocation4 + $0x1], 0  ;;  %s727_s15 = smov 0   ;;  %s729_s16 = smov 0  }
   0x4   :  { %s731_s17 = smov 0   ;;  %s733_s18 = smov 0  }
   0x5   :  { %s735_s19 = smov 0   ;;  %s737_s20 = smov 0  }
   0x6 LB: > { %s482_s21 = sadd.s32 4294967295, %s692_s20   ;;  %s483_s22 = sadd.s32 4294967294, %s692_s20   ;;  %s692_s20 = sphi %s737_s20, %s20_s20   ;;  %s688_s19 = sphi %s735_s19, %s930_s19   ;;  %s684_s18 = sphi %s733_s18, %s929_s18   ;;  %s680_s17 = sphi %s731_s17, %s928_s17   ;;  %s676_s16 = sphi %s729_s16, %s927_s16   ;;  %s672_s15 = sphi %s727_s15, %s926_s15  }
   0x7   : > { %s32_s23 = sadd.s32 1, %s688_s19  ;;  %s71_s24 = sadd.s32 1, %s680_s17 }
   0x8   : > { %p34_p0 = scmp.ge.s32.totalorder %s32_s23, 2  ;;  %p78_p1 = scmp.ne.s32.totalorder %s680_s17, %s676_s16 }
   0x9   : > { %p79_p2 = scmp.eq.s32.totalorder %s692_s20, 0  ;;  %p84_p3 = scmp.ne.s32.totalorder %s676_s16, %s672_s15 }
   0xa   : > { %s932_s23 = smov (%p34_p0, %s32_s23), 0  ;;  %p85_p5 = scmp.eq.s32.totalorder %s482_s21, 0 }
   0xb   : > { %p768_p4 = por %p79_p2, %p78_p1  ;;  %s66_s26 = ssub.s32 %s688_s19, %s932_s23 }
   0xc   : > { %p152_p6 = scmp.eq.s32.totalorder %s482_s21, 1  ;;  %p69_p7 = scmp.eq.s32.totalorder %s66_s26, 0 }
   0xd   : > { %p774_p8 = por %p85_p5, %p84_p3  ;;  %p158_p10 = scmp.eq.s32.totalorder %s483_s22, 1 }
   0xe   : > { %p778_p9 = por %p152_p6, %p78_p1  ;;  %p522_p13 = scmp.lt.s32.totalorder %s692_s20, 2 }
   0xf   : > { %s783_s29 = scalar_select %p69_p7, %s680_s17, %s71_s24  }
  0x10   : > { %s918_s28 = scalar_select %p778_p9, 1, 0 }
  0x11   : > { %p785_p11 = por %p158_p10, %p84_p3  ;;  %s195_s5 = sand.u32 1, %s680_s17  }
  0x12   : > { %s486_s6 = sshll.u32 %s195_s5, 1  ;;  %s500_s7 = sshll.u32 %s688_s19, 6 }
  0x13   : > { %s919_s30 = scalar_select %p785_p11, 1, 0 }
  0x14   : > { %s416_s10 = scalar_lea.hbm %s911_s1, %s500_s7  ;;  %s199_s11 = scalar_lea.vmem [#allocation2], %s486_s6 }
  0x15   : > { %s209_s12 = sshll.u32 %s199_s11, 4  ;;  %s796_s13 = scalar_lea.hbm %s416_s10, 32  ;;  %s798_s12 = int_to_ptr.vmem [resolvable:$true] %s209_s12 }
  0x16   : > { %p802_p0 = pnand %p522_p13, %p768_p4  ;;  %s196_s21 = scalar_lea.sflag [#allocation3], %s195_s5 }
  0x17   : > { %s609_s22 = scalar_lea.hbm %s416_s10, 64  ;;  %s584_s25 = scalar_lea.hbm %s911_s1, 128 }
  0x18   : > { %p580_p3 = scmp.ne.s32.totalorder %s796_s13, %s609_s22  ;;  %p581_p5 = pneg %p802_p0 }
  0x19   : > { %p585_p4 = scmp.lt.u32.totalorder %s796_s13, %s911_s1  ;;  %p586_p10 = scmp.lt.u32.totalorder %s584_s25, %s609_s22 }
  0x1a   : > { %p582_p6 = pnand %p581_p5, %p580_p3  ;;  %p588_p12 = scmp.lt.u32.totalorder %s609_s22, %s796_s13 }
  0x1b   : > { %p587_p13 = por %p586_p10, %p585_p4 }
  0x1c   : > { %p583_p7 = pneg %p582_p6 }
  0x1d   : > { %p589_p1 = por %p588_p12, %p587_p13 }
  0x1f   : > { %p590_p2 = pnand %p589_p1, %p583_p7 }
  0x21   : > { %593 = shalt.err (!%p590_p2)
}
  0x22   : > { %s594_s5 = scalar_lea.vmem %s798_s12, 32  ;;  %s694_s8 = smov [#allocation2]  }
  0x23   : > { %p595_p3 = scmp.ne.s32.totalorder %s798_s12, %s594_s5  ;;  %s599_s9 = sshll.u32 %s694_s8, 4  ;;  %s600_s9 = int_to_ptr.vmem [resolvable:$false] %s599_s9 }
  0x24   : > { %s601_s10 = scalar_lea.vmem %s600_s9, 64  ;;  %p602_p9 = scmp.lt.s32.totalorder %s798_s12, %s600_s9 }
  0x25   : > { %p597_p6 = pnand %p595_p3, %p581_p5  ;;  %p603_p4 = scmp.lt.s32.totalorder %s601_s10, %s594_s5 }
  0x27   : > { %p598_p11 = pneg %p597_p6  ;;  %p604_p10 = por %p603_p4, %p602_p9 }
  0x29   : > { %p605_p12 = pnand %p604_p10, %p598_p11 }
  0x2b   : > { %608 = shalt.err (!%p605_p12)
}
  0x2c   : > { %517 = dma.hbm_to_vmem [thread:$0]  (!%p802_p0), %s796_s13, 32, %s798_s12, %s196_s21  }
  0x2d   : > { %p921_p1 = scmp.lt.s32.totalorder %s692_s20, 3  ;;  %p922_p2 = scmp.ge.s32.totalorder %s692_s20, 1 }
  0x2f   : > { %p215_p5 = pnand %p922_p2, %p921_p1 }
  0x30   : > { %s837_s11 = sand.u32 (!%p215_p5), 1, %s676_s16  }
  0x31   : > { %218 = sbr.rel (%p215_p5) target bundleno = 422 (0x1a6), region = 36  ;;  %s490_s22 = sshll.u32 (!%p215_p5), %s837_s11, 1 }
  0x32   : > { %s221_s24 = scalar_lea.sflag (!%p215_p5), [#allocation3], %s837_s11  ;;  %s224_s26 = scalar_lea.vmem (!%p215_p5), [#allocation2], %s490_s22 }
  0x38   : > { %663 = dma.done.wait (%p774_p8), %s221_s24, 32  }
  0x39   : > { %665 = vsyncadd (%p774_p8), %s221_s24, 4294967264  ;;  %p257_p9 = scmp.lt.s32.totalorder %s684_s18, 1  ;;  %v273_v0 = vlaneseq  ;;  %v695_v1 = vmov 1983009808   ;;  %v696_v5 = vmov 0.0   ;;  %vm697_vm0 = vmmov 0  }
  0x3a   : > { %v271_v2 = vunpack.c.l.s4 %v695_v1  ;;  %504 = vmatprep.subr.bf16.mxu0 %v696_v5  ;;  %506 = vmatprep.mubr.msk.bf16.mxu0 %vm697_vm0, %v696_v5  ;;  %s698_s27 = smov 126   ;;  %s699_s6 = smov 127   ;;  %v494_v9 = vld.sshfl [vmem:[%s224_s26] sm:$0x3 pattern:$0x76325410] }
  0x3b   : > { %s258_s12 = scalar_select %p257_p9, %s684_s18, 1  ;;  %v274_v3 = vshrl.u32 %v273_v0, 7  ;;  %v700_v10 = vmov 0   ;;  %v313_v11 = vld [vmem:[%s913_s3] sm:$0xff]  ;;  %vm297_vm1 = vcmask 1031168   ;;  %vm289_vm2 = vcmask 1039360  }
  0x3c   : > { %v272_v4 = vunpack.c.0.s8 %v271_v2  ;;  %578 = vset.pattern.permute.xlu0 %v700_v10  ;;  %vm305_vm3 = vcmask 1041408   ;;  %vm309_vm4 = vcmask 1043456   ;;  %vm323_vm5 = vcmask 1045504   ;;  %v312_v23 = vld [vmem:[%s912_s2] sm:$0xf]  ;;  %s491_s10 = sshll.u32 %s837_s11, 3 }
  0x3d   : > { %s501_s13 = sshll.u32 %s258_s12, 2  ;;  %vm319_vm6 = vcmask 97280   ;;  %s497_s22 = sshll.u32 %s684_s18, 7 }
  0x3e   : > { %s264_s25 = scalar_lea.vmem %s910_s0, %s501_s13  ;;  %v275_v6 = vsub.s32 %v272_v4, %v274_v3  ;;  %s256_s24 = scalar_lea.vmem [#allocation5], %s491_s10 }
  0x3f   : > { %v267_v7 = vld [vmem:[%s264_s25] sm:$0x3]  ;;  %s382_s26 = sshll.u32 %s256_s24, 4  ;;  %s861_s14 = scalar_lea.hbm %s914_s4, %s497_s22  ;;  %s863_s26 = int_to_ptr.vmem [resolvable:$true] %s382_s26 }
  0x40   : > { %v276_v8 = vrot.slane %v267_v7, %v275_v6  ;;  %s368_s21 = scalar_lea.sflag [#allocation4], %s837_s11  ;;  %s610_s18 = scalar_lea.vmem %s863_s26, 128 }
  0x41   : > { %p611_p8 = scmp.ne.s32.totalorder %s863_s26, %s610_s18  ;;  %p923_p11 = scmp.ne.s32.totalorder %s918_s28, 0 }
  0x42   : > { %293 = vrot.lane.b32.xlu1 %v276_v8, %s698_s27  ;;  %277 = vrot.lane.b32.xlu0 %v276_v8, %s699_s6  ;;  %s701_s25 = smov [#allocation5]  }
  0x43   : > { %p612_p0 = pnand %p611_p8, %p923_p11 }
  0x45   : > { %p613_p7 = pneg %p612_p0 }
  0x46   : > { %295 = vrot.lane.b32.xlu1 %v494_v9, %s698_s27  ;;  %287 = vrot.lane.b32.xlu0 %v494_v9, %s699_s6  ;;  %s614_s27 = sshll.u32 %s701_s25, 4  ;;  %s615_s27 = int_to_ptr.vmem [resolvable:$false] %s614_s27 }
  0x47   : > { %s616_s6 = scalar_lea.vmem %s615_s27, 256  ;;  %p617_p13 = scmp.lt.s32.totalorder %s863_s26, %s615_s27 }
  0x48   : > { %p618_p3 = scmp.lt.s32.totalorder %s616_s6, %s610_s18 }
  0x4a   : > { %316 = vperm.xlu0 %578, %v313_v11   ;;  %p619_p6 = por %p618_p3, %p617_p13 }
  0x4c   : > { %p620_p4 = pnand %p619_p6, %p613_p7 }
  0xb4   : > { %v294_v12 = vpop.permute.xlu1 %293  ;;  %v278_v13 = vpop.permute.xlu0 %277 }
  0xb8   : > { %v296_v14 = vpop.permute.xlu1 %295  ;;  %v288_v15 = vpop.permute.xlu0 %287 }
  0xb9   : > { %v300_v16 = vsel %vm297_vm1, %v294_v12, %v296_v14  ;;  %v292_v17 = vsel %vm289_vm2, %v278_v13, %v288_v15 }
  0xba   : > { %v304_v18 = vrot.slane %v300_v16, 4  ;;  %v302_v19 = vrot.slane %v292_v17, 6 }
  0xbc   : > { %v308_v20 = vsel %vm305_vm3, %v267_v7, %v302_v19 }
  0xbd   : > { %v311_v21 = vsel %vm309_vm4, %v308_v20, %v304_v18 }
  0xbe   : > { %v324_v22 = vsel %vm323_vm5, %v311_v21, 0 }
  0xbf   : > { %505 = vmatpush3.bf16.msra.mxu0 %v324_v22 }
  0xc2   : > { %507 = vmatmul.mubr.msk.bf16.vlgmr.msra.gmra.mrb[0].mxu0 %vm319_vm6, %v312_v23 }
  0xc9   : > { %v317_v24 = vpop.permute.xlu0 %316 }
 0x195   : > { %v360_v25 = vpop.f32.mrb[0].mxu0 }
 0x196   : > { %v361_v26 = vadd.f32 %v360_v25, %v317_v24  ;;  %v508_v27 = vpop.f32.mrb[1].mxu0 }
 0x197   : > { %v363_v28 = vpop.f32.mrb[2].mxu0 }
 0x198   : > { %366 = vst [vmem:[%s256_s24] sm:$0xff] %v361_v26  ;;  %v509_v29 = vpop.f32.mrb[3].mxu0 }
 0x199   : > { %623 = shalt.err (!%p620_p4)
}
 0x19a   : > { %s624_s11 = scalar_lea.hbm %s861_s14, 128  ;;  %s628_s8 = scalar_lea.hbm %s914_s4, 256 }
 0x19b   : > { %p625_p10 = scmp.ne.s32.totalorder %s861_s14, %s624_s11  ;;  %p629_p2 = scmp.lt.u32.totalorder %s861_s14, %s914_s4 }
 0x19c   : > { %p630_p5 = scmp.lt.u32.totalorder %s628_s8, %s624_s11  ;;  %p632_p8 = scmp.lt.u32.totalorder %s624_s11, %s861_s14 }
 0x19d   : > { %p626_p12 = pnand %p625_p10, %p923_p11 }
 0x19e   : > { %p631_p9 = por %p630_p5, %p629_p2 }
 0x19f   : > { %p627_p1 = pneg %p626_p12 }
 0x1a0   : > { %p633_p0 = por %p632_p8, %p631_p9 }
 0x1a2   : > { %p634_p7 = pnand %p633_p0, %p627_p1 }
 0x1a4   : > { %637 = shalt.err (!%p634_p7)
}
 0x1a5   : > { %512 = dma.vmem_to_hbm [thread:$0]  (%p923_p11), %s863_s26, 128, %s861_s14, %s368_s21  }
 0x1a6 PF: > { %s394_s22 = sand.u32 1, %s672_s15   ;;  %p924_p13 = scmp.ne.s32.totalorder %s919_s30, 0 }
 0x1a7   : > { %p925_p3 = scmp.ge.s32.totalorder %s692_s20, 2  ;;  %s395_s24 = scalar_lea.sflag [#allocation4], %s394_s22 }
 0x1a9   : > { %p519_p6 = pnand %p925_p3, %p924_p13 }
 0x1ab   : > { %667 = dma.done.wait (!%p519_p6), %s395_s24, 128  }
 0x1ac   : > { %669 = vsyncadd (!%p519_p6), %s395_s24, 4294967168  ;;  %s20_s20 = sadd.s32 1, %s692_s20   ;;  %s926_s15 = smov %s676_s16 }
 0x1ad   : > { %p17_p4 = scmp.ge.s32.totalorder %s20_s20, 4   ;;  %s927_s16 = smov %s680_s17 }
 0x1ae   : > { %s928_s17 = smov %s783_s29  ;;  %s929_s18 = smov %s688_s19 }
 0x1af   : > { %s930_s19 = smov %s932_s23  ;;  %19 = sbr.rel (!%p17_p4) target bundleno = 6 (0x6), region = 84 }
 0x1b6   :  { %400 = vsyncpa [#allocation3], 1 }
 0x1b7   :  { %402 = vsyncpa [#allocation3 + $0x1], 1 }
 0x1b8   :  { %403 = vsyncpa [#allocation4], 1 }
 0x1b9   :  { %405 = vsyncpa [#allocation4 + $0x1], 1 }

</bundles_post_ra>
